<compile_context>
chip_gen: v6e
topology: v6e:2x2x1
jax: 0.10.0
libtpu: 0.0.40
codegen_flags: <defaults>
</compile_context>

<pallas_src>
import functools

import jax
import jax.numpy as jnp
from jax.experimental import pallas as pl
from jax.experimental.pallas import tpu as pltpu


def _synced_ln_kernel(x_ref, wb_ref, o_ref, *, eps, hidden, mean_center, use_bias):
    # x_ref: (block_rows, H)   wb_ref: (2 or 1, H) fused [weight; bias]   o_ref: (block_rows, H)
    #
    # One bf16/int -> f32 unpack per element; the normalize is a single fused
    # elementwise chain written straight to o_ref so Mosaic streams it per-vreg
    # instead of materializing extra full-block f32 temporaries (peak live set
    # is ~2 f32 block temporaries: `x` and `centered`, briefly overlapping).
    x = x_ref[...].astype(jnp.float32)
    mean = jnp.mean(x, axis=-1, keepdims=True)
    centered = x - mean
    # Unbiased (Bessel-corrected) variance over the full hidden dim — exactly what
    # the module's variance_formula reconstructs from the per-shard statistics.
    # (Kept as the two-pass form to avoid E[x^2]-mean^2 cancellation loss.)
    var = jnp.sum(centered * centered, axis=-1, keepdims=True) * (1.0 / max(hidden - 1, 1))
    inv = jax.lax.rsqrt(var + eps)                       # EUP slot; off the VALU path
    w = wb_ref[0:1, :].astype(jnp.float32)
    y = (centered if mean_center else x) * inv * w       # fused chain -> single store
    if use_bias:
        y = y + wb_ref[1:2, :].astype(jnp.float32)
    o_ref[...] = y.astype(o_ref.dtype)                   # one pack at the lane-dense vst


def _vmem_limit_bytes():
    """Per-generation scoped-VMEM limit: ~3/4 of physical, capped at 96 MiB.

    v5e/v6e (128 MiB physical) -> 96 MiB; v7x (64 MiB physical) -> 48 MiB.
    """
    try:
        cap = int(pltpu.get_tpu_info().vmem_capacity_bytes)
    except Exception:
        cap = 64 << 20  # conservative (v7x-sized) fallback
    return min((cap * 3) // 4, 96 << 20)


def _num_tensorcores():
    """Best-effort TensorCore count per chip (2 on v7x, 1 on v5e/v6e)."""
    try:
        info = pltpu.get_tpu_info()
        for attr in ("num_cores", "num_cores_per_chip", "core_count", "tensorcore_count"):
            v = getattr(info, attr, None)
            if v:
                return max(1, int(v))
    except Exception:
        pass
    try:
        return max(1, int(getattr(jax.devices()[0], "num_cores", 1) or 1))
    except Exception:
        return 1


def _choose_block_rows(rows, hidden, itemsize, tile_budget_bytes, num_cores):
    """Pick the largest dtype-aligned row tile that fits the VMEM budget."""
    # dtype-aware sublane packing: 8 rows / f32 vreg, 16 / bf16, 32 / int8-fp8.
    sublane = max(8, 32 // max(int(itemsize), 1))
    if rows <= sublane:
        return int(rows)  # single block equal to the full row extent (always legal)
    # VMEM per row of block: double-buffered input tile + double-buffered output
    # tile + ~2 f32 full-block temporaries live in the fused two-pass body.
    bytes_per_row = 2 * hidden * itemsize + 2 * hidden * itemsize + 2 * hidden * 4
    cap = tile_budget_bytes // max(bytes_per_row, 1)
    cap = min(int(cap), 1024)  # diminishing returns past ~1K rows
    if num_cores >= 2:
        # Only on multi-TensorCore chips (v7x): keep >= num_cores grid steps so the
        # "parallel" grid axis actually gives every core work. On 1-TC v5e/v6e the
        # grid is a serial loop, so splitting would just double per-step overhead.
        per_core = (pl.cdiv(rows, num_cores) // sublane) * sublane
        if per_core >= sublane:
            cap = min(cap, per_core)
    # Stay <= rows (rounded down to a sublane multiple); the tail block is masked.
    max_block = (rows // sublane) * sublane
    block = (min(cap, max_block) // sublane) * sublane
    return int(max(sublane, block))


def synced_layer_norm(x, weight, bias=None, *, eps=1e-5, mean_center=True, block_rows=None):
    """Forward pass of SyncedModelParallelFusedLayerNorm over the last dim of x.

    x: (..., H); weight: (H,); bias: (H,) or None.
    """
    orig_shape = x.shape
    hidden = int(orig_shape[-1])
    rows = 1
    for d in orig_shape[:-1]:
        rows *= int(d)

    # No padding / concatenate: reshape is layout-preserving (no extra HBM copy);
    # the partial tail block (if any) is handled by Pallas' masked boundary block.
    x2 = x.reshape(rows, hidden)

    use_bias = bias is not None
    if use_bias:
        # Fuse weight+bias into one (2, H) constant-index input: one DMA descriptor
        # and one VMEM buffer pair instead of two 1-sublane blocks.
        wb = jnp.stack([weight, bias], axis=0)
    else:
        # No fabricated zero bias: skip the extra HBM allocation / DMA entirely.
        wb = weight.reshape(1, hidden)

    itemsize = jnp.dtype(x.dtype).itemsize
    vmem_limit = _vmem_limit_bytes()
    num_cores = _num_tensorcores()
    if block_rows is None:
        # bytes_per_row already includes double-buffering, so only keep ~15% headroom.
        block_rows = _choose_block_rows(
            rows, hidden, itemsize, (vmem_limit * 85) // 100, num_cores)

    grid = (pl.cdiv(rows, block_rows),)

    cost = pl.CostEstimate(
        flops=8 * rows * hidden,
        transcendentals=rows,
        bytes_accessed=2 * rows * hidden * int(itemsize)
        + wb.shape[0] * hidden * jnp.dtype(wb.dtype).itemsize,
    )

    out = pl.pallas_call(
        functools.partial(
            _synced_ln_kernel,
            eps=float(eps),
            hidden=hidden,
            mean_center=mean_center,
            use_bias=use_bias,
        ),
        out_shape=jax.ShapeDtypeStruct((rows, hidden), x.dtype),
        grid_spec=pltpu.PrefetchScalarGridSpec(
            num_scalar_prefetch=0,
            grid=grid,
            in_specs=[
                # Default double-buffered input; blocks are sized large so DMA
                # latency stays hidden without spending VMEM on deeper buffering.
                pl.BlockSpec((block_rows, hidden), lambda i: (i, 0)),
                # weight/bias: constant block index -> stays VMEM-resident, no re-DMA.
                pl.BlockSpec((wb.shape[0], hidden), lambda i: (0, 0)),
            ],
            # Lane-dense output (full H as the last block dim) -> unmasked vst.
            out_specs=pl.BlockSpec((block_rows, hidden), lambda i: (i, 0)),
        ),
        compiler_params=pltpu.CompilerParams(
            # Rows are independent -> shard the grid across v7x's two TensorCores.
            # TODO(synk): verify on v7x xprof that "parallel" splits the 1-D grid
            # across both TCs; if not, switch to pltpu.CORE_PARALLEL.
            dimension_semantics=("parallel",),
            vmem_limit_bytes=int(vmem_limit),
        ),
        cost_estimate=cost,
    )(x2, wb)

    return out.reshape(orig_shape)


def _reference(x, weight, bias, eps, mean_center=True):
    x32 = x.astype(jnp.float32)
    hidden = x.shape[-1]
    mean = jnp.mean(x32, axis=-1, keepdims=True)
    var = jnp.sum((x32 - mean) ** 2, axis=-1, keepdims=True) / (hidden - 1)
    y = ((x32 - mean) if mean_center else x32) * jax.lax.rsqrt(var + eps)
    out = y * weight
    if bias is not None:
        out = out + bias
    return out.astype(x.dtype)


if __name__ == "__main__":
    key = jax.random.PRNGKey(0)
    k1, k2 = jax.random.split(key)

    batch, seq, hidden = 2, 8, 32  # normalized (partition) size = hidden
    x = jax.random.normal(k1, (batch, seq, hidden), dtype=jnp.float32)

    # Deterministic parameter init matching the module defaults (ones / zeros).
    weight = jnp.ones((hidden,), dtype=jnp.float32)
    bias = jnp.zeros((hidden,), dtype=jnp.float32)

    out = jax.block_until_ready(synced_layer_norm(x, weight, bias, eps=1e-5))
    ref = _reference(x, weight, bias, 1e-5)
    assert jnp.allclose(out, ref, atol=1e-5, rtol=1e-5), "mismatch vs reference"

    # Second case: row count not divisible by the row tile -> exercises the
    # masked partial tail block (no host-side padding copy).
    x_odd = jax.random.normal(k2, (3, 7, hidden), dtype=jnp.float32)
    out_odd = jax.block_until_ready(synced_layer_norm(x_odd, weight, bias, eps=1e-5))
    ref_odd = _reference(x_odd, weight, bias, 1e-5)
    assert jnp.allclose(out_odd, ref_odd, atol=1e-5, rtol=1e-5), "mismatch vs reference (odd rows)"

    # Third case: use_bias=False path (no fabricated zero-bias input).
    out_nb = jax.block_until_ready(synced_layer_norm(x, weight, None, eps=1e-5))
    ref_nb = _reference(x, weight, None, 1e-5)
    assert jnp.allclose(out_nb, ref_nb, atol=1e-5, rtol=1e-5), "mismatch vs reference (no bias)"

    print("KERNEL_OK")
</pallas_src>

<mosaic_0001>
module attributes {stable_mosaic.version = 11 : i64} {
  func.func @_synced_ln_kernel(%arg0: i32, %arg1: memref<16x32xf32, #tpu.memory_space<vmem>>, %arg2: memref<2x32xf32, #tpu.memory_space<vmem>>, %arg3: memref<16x32xf32, #tpu.memory_space<vmem>>) attributes {dimension_semantics = [#tpu.dimension_semantics<parallel>], iteration_bounds = array<i64: 1>, scalar_prefetch = 0 : i64, scratch_operands = 0 : i64, tpu.core_type = #tpu.core_type<tc>, window_params = [{transform_indices = @transform_0, window_bounds = array<i64: 16, 32>}, {pipeline_mode = #tpu.pipeline_mode<synchronous>, transform_indices = @transform_1, window_bounds = array<i64: 2, 32>}, {transform_indices = @transform_2, window_bounds = array<i64: 16, 32>}]} {
    %c0 = arith.constant 0 : index
    %c0_0 = arith.constant 0 : index
    %0 = vector.load %arg1[%c0, %c0_0] : memref<16x32xf32, #tpu.memory_space<vmem>>, vector<16x32xf32>
    %cst = arith.constant dense<0.000000e+00> : vector<16xf32>
    %1 = vector.multi_reduction <add>, %0, %cst [1] : vector<16x32xf32> to vector<16xf32>
    %2 = vector.shape_cast %1 : vector<16xf32> to vector<16x1xf32>
    %cst_1 = arith.constant 3.200000e+01 : f32
    %3 = vector.broadcast %cst_1 : f32 to vector<16x1xf32>
    %4 = arith.divf %2, %3 : vector<16x1xf32>
    %5 = vector.broadcast %4 : vector<16x1xf32> to vector<16x32xf32>
    %6 = arith.subf %0, %5 : vector<16x32xf32>
    %7 = arith.mulf %6, %6 : vector<16x32xf32>
    %cst_2 = arith.constant dense<0.000000e+00> : vector<16xf32>
    %8 = vector.multi_reduction <add>, %7, %cst_2 [1] : vector<16x32xf32> to vector<16xf32>
    %9 = vector.shape_cast %8 : vector<16xf32> to vector<16x1xf32>
    %cst_3 = arith.constant 0.0322580636 : f32
    %10 = vector.broadcast %cst_3 : f32 to vector<16x1xf32>
    %11 = arith.mulf %9, %10 : vector<16x1xf32>
    %cst_4 = arith.constant 9.99999974E-6 : f32
    %12 = vector.broadcast %cst_4 : f32 to vector<16x1xf32>
    %13 = arith.addf %11, %12 : vector<16x1xf32>
    %14 = math.rsqrt %13 : vector<16x1xf32>
    %c0_5 = arith.constant 0 : index
    %c0_6 = arith.constant 0 : index
    %15 = vector.load %arg2[%c0_5, %c0_6] : memref<2x32xf32, #tpu.memory_space<vmem>>, vector<1x32xf32>
    %16 = vector.broadcast %14 : vector<16x1xf32> to vector<16x32xf32>
    %17 = arith.mulf %6, %16 : vector<16x32xf32>
    %18 = vector.broadcast %15 : vector<1x32xf32> to vector<16x32xf32>
    %19 = arith.mulf %17, %18 : vector<16x32xf32>
    %c1 = arith.constant 1 : index
    %c0_7 = arith.constant 0 : index
    %20 = vector.load %arg2[%c1, %c0_7] : memref<2x32xf32, #tpu.memory_space<vmem>>, vector<1x32xf32>
    %21 = vector.broadcast %20 : vector<1x32xf32> to vector<16x32xf32>
    %22 = arith.addf %19, %21 : vector<16x32xf32>
    %c0_8 = arith.constant 0 : index
    %c0_9 = arith.constant 0 : index
    %23 = vector.load %arg3[%c0_8, %c0_9] : memref<16x32xf32, #tpu.memory_space<vmem>>, vector<16x32xf32>
    tpu.vector_store %arg3[%c0_8, %c0_9], %22 {strides = array<i32>} : memref<16x32xf32, #tpu.memory_space<vmem>>, vector<16x32xf32>,
    return
  }
  func.func @transform_0(%arg0: i32) -> (i32, i32) {
    %c0_i32 = arith.constant 0 : i32
    %c0_i32_0 = arith.constant 0 : i32
    return %arg0, %c0_i32 : i32, i32
  }
  func.func @transform_1(%arg0: i32) -> (i32, i32) {
    %c0_i32 = arith.constant 0 : i32
    %c0_i32_0 = arith.constant 0 : i32
    %c0_i32_1 = arith.constant 0 : i32
    return %c0_i32, %c0_i32_0 : i32, i32
  }
  func.func @transform_2(%arg0: i32) -> (i32, i32) {
    %c0_i32 = arith.constant 0 : i32
    %c0_i32_0 = arith.constant 0 : i32
    return %arg0, %c0_i32 : i32, i32
  }
}

</mosaic_0001>

<bundles_post_ra>
// kernel: tpu_custom_call.1
= control target key start
LH: loop header
LB: loop body
LE: loop exit
PB: predicated region body
PF: predicated region fallthrough
CT: control target
= control target key end

     0   :  { %7 = vsyncpa [#allocation3], 0  ;;  %s220_s0 = inlined_call_operand.hbm [shape: f32[16,32], index: 0, kind: input, shape index: {}]   ;;  %s221_s1 = inlined_call_operand.hbm [shape: f32[2,32], index: 1, kind: input, shape index: {}]   ;;  %s222_s2 = inlined_call_operand.hbm [shape: f32[16,32], index: 2, kind: output, shape index: {}]  }
   0x1   :  { %8 = vsyncpa [#allocation6], 0 }
   0x2   :  { %9 = vsyncpa [#allocation4], 0  ;;  %s179_s9 = smov [#allocation2]  }
   0x3   :  { %s15_s10 = sshll.u32 %s179_s9, 4  ;;  %s16_s10 = int_to_ptr.vmem [resolvable:$true] %s15_s10 }
   0x4   :  { %s121_s11 = scalar_lea.vmem %s16_s10, 256  ;;  %p126_p1 = scmp.lt.s32.totalorder %s16_s10, %s16_s10 }
   0x5   :  { %p122_p0 = scmp.ne.s32.totalorder %s16_s10, %s121_s11  ;;  %p127_p2 = scmp.lt.s32.totalorder %s121_s11, %s121_s11 }
   0x7   :  { %p128_p3 = por %p127_p2, %p126_p1 }
   0x9   :  { %p129_p4 = pnand %p128_p3, %p122_p0 }
   0xb   :  { %132 = shalt.err (!%p129_p4)
}
   0xc   :  { %s180_s12 = smov 128   ;;  %s181_s13 = smov 8  }
   0xd   :  { %21 = dma.hbm_to_vmem [thread:$0]  %s220_s0, 256, %s16_s10, [#allocation3], %s180_s12, %s180_s12, %s181_s13  }
   0xe   :  { %s182_s16 = smov [#allocation5]  }
   0xf   :  { %s28_s17 = sshll.u32 %s182_s16, 4  ;;  %s29_s17 = int_to_ptr.vmem [resolvable:$true] %s28_s17 }
  0x10   :  { %s141_s18 = scalar_lea.vmem %s29_s17, 32  ;;  %p146_p6 = scmp.lt.s32.totalorder %s29_s17, %s29_s17 }
  0x11   :  { %p142_p5 = scmp.ne.s32.totalorder %s29_s17, %s141_s18  ;;  %p147_p7 = scmp.lt.s32.totalorder %s141_s18, %s141_s18 }
  0x13   :  { %p148_p8 = por %p147_p7, %p146_p6 }
  0x15   :  { %p149_p9 = pnand %p148_p8, %p142_p5 }
  0x17   :  { %152 = shalt.err (!%p149_p9)
}
  0x18   :  { %31 = dma.hbm_to_vmem [thread:$0]  %s221_s1, 32, %s29_s17, [#allocation6]  }
  0x19   :  { %173 = dma.done.wait [#allocation3], 256  }
  0x1a   :  { %174 = vsyncadd [#allocation3], 4294967040 }
  0x1b   :  { %175 = dma.done.wait [#allocation6], 32  }
  0x1c   :  { %176 = vsyncadd [#allocation6], 4294967264  ;;  %vm40_vm0 = vcmask 261120   ;;  %v38_v0 = vld [vmem:[#allocation2] sm:$0xff]  ;;  %v39_v1 = vld [vmem:[#allocation2 + $0x8] sm:$0xff]  ;;  %s183_s0 = smov [#allocation7]  }
  0x1d   :  { %v41_v2 = vsel %vm40_vm0, %v38_v0, 0.0  ;;  %v44_v3 = vsel %vm40_vm0, %v39_v1, 0.0  ;;  %v102_v21 = vld [vmem:[#allocation5] ss:$0 sm:$0xff]  ;;  %v103_v23 = vld [vmem:[#allocation5 + $0x1] ss:$0 sm:$0xff] }
  0x1e   :  { %42 = vadd.xlane.f32.xlu0 %v41_v2  ;;  %s89_s1 = sshll.u32 %s183_s0, 4  ;;  %s90_s1 = int_to_ptr.vmem [resolvable:$true] %s89_s1 }
  0x1f   :  { %s153_s21 = scalar_lea.vmem %s90_s1, 256  ;;  %p158_p11 = scmp.lt.s32.totalorder %s90_s1, %s90_s1 }
  0x20   :  { %p154_p10 = scmp.ne.s32.totalorder %s90_s1, %s153_s21  ;;  %p159_p12 = scmp.lt.s32.totalorder %s153_s21, %s153_s21 }
  0x22   :  { %45 = vadd.xlane.f32.xlu0 %v44_v3  ;;  %p160_p13 = por %p159_p12, %p158_p11 }
  0x24   :  { %p161_p0 = pnand %p160_p13, %p154_p10 }
  0xa7   :  { %v43_v4 = vpop.xlane.xlu0 %42 }
  0xa8   :  { %v48_v5 = vmul.f32 0.03125, %v43_v4 }
  0xaa   :  { %v50_v6 = vsub.f32 %v38_v0, %v48_v5 }
  0xab   :  { %v46_v7 = vpop.xlane.xlu0 %45 }
  0xac   :  { %v49_v8 = vmul.f32 0.03125, %v46_v7  ;;  %v52_v9 = vmul.f32 %v50_v6, %v50_v6 }
  0xae   :  { %v51_v10 = vsub.f32 %v39_v1, %v49_v8  ;;  %v54_v11 = vsel %vm40_vm0, %v52_v9, 0.0 }
  0xaf   :  { %55 = vadd.xlane.f32.xlu1 %v54_v11 }
  0xb0   :  { %v53_v12 = vmul.f32 %v51_v10, %v51_v10 }
  0xb2   :  { %v57_v13 = vsel %vm40_vm0, %v53_v12, 0.0 }
  0xb3   :  { %58 = vadd.xlane.f32.xlu1 %v57_v13 }
 0x138   :  { %v56_v14 = vpop.xlane.xlu1 %55 }
 0x139   :  { %v60_v15 = vmul.f32 0.032258064, %v56_v14 }
 0x13b   :  { %v62_v16 = vadd.f32 1e-05, %v60_v15 }
 0x13c   :  { %v59_v17 = vpop.xlane.xlu1 %58 }
 0x13d   :  { %109 = vrsqrt.f32 %v62_v16  ;;  %v61_v18 = vmul.f32 0.032258064, %v59_v17 }
 0x13f   :  { %v63_v19 = vadd.f32 1e-05, %v61_v18 }
 0x141   :  { %111 = vrsqrt.f32 %v63_v19 }
 0x14a   :  { %v110_v20 = vpop.eup %109 }
 0x14b   :  { %v67_v22 = vmul.f32 %v110_v20, %v50_v6 }
 0x14d   :  { %v73_v24 = vmul.f32 %v102_v21, %v67_v22 }
 0x14e   :  { %v112_v25 = vpop.eup %111 }
 0x14f   :  { %v68_v26 = vmul.f32 %v112_v25, %v51_v10  ;;  %v80_v27 = vadd.f32 %v103_v23, %v73_v24 }
 0x151   :  { %v74_v28 = vmul.f32 %v102_v21, %v68_v26  ;;  %82 = vst.msk [vmem:[#allocation7] sm:$0xff] %vm40_vm0, %v80_v27 }
 0x153   :  { %v81_v29 = vadd.f32 %v103_v23, %v74_v28 }
 0x155   :  { %83 = vst.msk [vmem:[#allocation7 + $0x8] sm:$0xff] %vm40_vm0, %v81_v29 }
 0x156   :  { %164 = shalt.err (!%p161_p0)
}
 0x157   :  { %95 = dma.vmem_to_hbm [thread:$0]  %s90_s1, 256, %s222_s2, [#allocation4], %s180_s12, %s180_s12, %s181_s13  }
 0x158   :  { %177 = dma.done.wait [#allocation4], 256  }
 0x159   :  { %178 = vsyncadd [#allocation4], 4294967040 }
 0x15a   :  { %99 = vsyncpa [#allocation3], 1 }
 0x15b   :  { %100 = vsyncpa [#allocation6], 1 }
 0x15c   :  { %101 = vsyncpa [#allocation4], 1 }

</bundles_post_ra>
